<compile_context>
chip_gen: v7x
topology: tpu7x:2x2x1
jax: 0.10.0
libtpu: 0.0.40
codegen_flags: <defaults>
</compile_context>

<pallas_src>
import math
from functools import partial

import jax
import jax.numpy as jnp
from jax.experimental import pallas as pl
from jax.experimental.pallas import tpu as pltpu


# ------------------------------- kernel ------------------------------------


def mlp_kernel(x_ref, w_ref, b_ref, o_ref):
    # x: (TB, K) f32, w: (K, Npad) bf16, b: (1, Npad) f32, o: (TB, Npad) f32
    x = x_ref[...].astype(jnp.bfloat16)                     # cast in-kernel (VPU slack)
    logits = jnp.dot(x, w_ref[...],
                     preferred_element_type=jnp.float32) + b_ref[...]
    # Padded class lanes carry -1e30 in the bias -> they vanish in the softmax.
    m = jnp.max(logits, axis=-1, keepdims=True)
    p = jnp.exp(logits - m)
    denom = jnp.sum(p, axis=-1, keepdims=True)
    o_ref[...] = p * pl.reciprocal(denom, approx=True)


# ------------------------------- wrapper ------------------------------------


def _round_up(x, m):
    return (x + m - 1) // m * m


def prepare_params(weight, bias):
    """One-time (param-load-time) layout prep: (N, K) -> (K, Npad) bf16 weight,
    (1, Npad) f32 bias with -1e30 in the padded lanes (softmax mask for free)."""
    num_classes, K = weight.shape
    Npad = _round_up(num_classes, 128)
    w_p = jnp.zeros((K, Npad), jnp.bfloat16).at[:, :num_classes].set(
        weight.T.astype(jnp.bfloat16))
    b_p = jnp.full((1, Npad), -1e30, jnp.float32).at[0, :num_classes].set(
        bias.astype(jnp.float32))
    return w_p, b_p


@partial(jax.jit, static_argnames=("num_classes", "block_rows"))
def mlp_forward(x, w_p, b_p, num_classes, *, block_rows=512):
    """x: (B, ...) with prod(...) == K; w_p: (K, Npad) bf16; b_p: (1, Npad) f32."""
    B = x.shape[0]
    x2 = x.reshape(B, -1)                     # flatten(start_dim=1); no copy/pad of x
    K = x2.shape[1]
    Npad = w_p.shape[1]
    assert w_p.shape[0] == K

    TB = min(block_rows, _round_up(B, 8))     # batch tile (multiple of 8 sublanes)
    grid = (pl.cdiv(B, TB),)                  # overhanging last tile is OK

    out = pl.pallas_call(
        mlp_kernel,
        out_shape=jax.ShapeDtypeStruct((B, Npad), jnp.float32),
        grid_spec=pltpu.PrefetchScalarGridSpec(
            num_scalar_prefetch=0,
            grid=grid,
            in_specs=[
                pl.BlockSpec((TB, K), lambda i: (i, 0)),      # streamed activations
                pl.BlockSpec((K, Npad), lambda i: (0, 0)),    # resident weight
                pl.BlockSpec((1, Npad), lambda i: (0, 0)),    # resident bias (+mask)
            ],
            out_specs=pl.BlockSpec((TB, Npad), lambda i: (i, 0)),
        ),
        compiler_params=pltpu.CompilerParams(
            dimension_semantics=("parallel",),
            vmem_limit_bytes=48 * 1024 * 1024,
        ),
    )(x2, w_p, b_p)

    return out[:, :num_classes]


# --------------------------------- main --------------------------------------


if __name__ == "__main__":
    num_classes = 10
    batch, C, H, W = 8, 2, 40, 40             # 2 * 40 * 40 = 3200 flattened features
    in_features = C * H * W

    key = jax.random.PRNGKey(0)
    kx, kw, kb = jax.random.split(key, 3)
    x = jax.random.normal(kx, (batch, C, H, W), jnp.float32)
    # nn.init.uniform_ default range [0, 1) for the weight (as in init_weight);
    # bias uses the nn.Linear default uniform(-1/sqrt(fan_in), 1/sqrt(fan_in)).
    weight = jax.random.uniform(kw, (num_classes, in_features), jnp.float32, 0.0, 1.0)
    bound = 1.0 / math.sqrt(in_features)
    bias = jax.random.uniform(kb, (num_classes,), jnp.float32, -bound, bound)

    # Parameter prep happens ONCE (hoisted out of the forward pass).
    w_p, b_p = prepare_params(weight, bias)

    out = mlp_forward(x, w_p, b_p, num_classes)
    out = jax.block_until_ready(out)

    # Reference with the same bf16 matmul precision (checks kernel plumbing).
    ref = jax.nn.softmax(
        jnp.dot(x.reshape(batch, -1).astype(jnp.bfloat16),
                weight.T.astype(jnp.bfloat16),
                preferred_element_type=jnp.float32) + bias,
        axis=-1)

    assert out.shape == (batch, num_classes)
    assert bool(jnp.all(jnp.isfinite(out)))
    assert bool(jnp.all(jnp.abs(jnp.sum(out, axis=1) - 1.0) < 1e-2))
    assert bool(jnp.max(jnp.abs(out - ref)) < 1e-2)
    print("KERNEL_OK")
</pallas_src>

<mosaic_0001>
module attributes {stable_mosaic.version = 11 : i64} {
  func.func @mlp_kernel(%arg0: i32, %arg1: memref<8x3200xf32, #tpu.memory_space<vmem>>, %arg2: memref<3200x128xbf16, #tpu.memory_space<vmem>>, %arg3: memref<1x128xf32, #tpu.memory_space<vmem>>, %arg4: memref<8x128xf32, #tpu.memory_space<vmem>>) attributes {dimension_semantics = [#tpu.dimension_semantics<parallel>], iteration_bounds = array<i64: 1>, scalar_prefetch = 0 : i64, scratch_operands = 0 : i64, tpu.core_type = #tpu.core_type<tc>, window_params = [{transform_indices = @transform_0, window_bounds = array<i64: 8, 3200>}, {pipeline_mode = #tpu.pipeline_mode<synchronous>, transform_indices = @transform_1, window_bounds = array<i64: 3200, 128>}, {pipeline_mode = #tpu.pipeline_mode<synchronous>, transform_indices = @transform_2, window_bounds = array<i64: 1, 128>}, {transform_indices = @transform_3, window_bounds = array<i64: 8, 128>}]} {
    %c0 = arith.constant 0 : index
    %c0_0 = arith.constant 0 : index
    %0 = vector.load %arg1[%c0, %c0_0] : memref<8x3200xf32, #tpu.memory_space<vmem>>, vector<8x3200xf32>
    %1 = arith.truncf %0 : vector<8x3200xf32> to vector<8x3200xbf16>
    %c0_1 = arith.constant 0 : index
    %c0_2 = arith.constant 0 : index
    %2 = vector.load %arg2[%c0_1, %c0_2] : memref<3200x128xbf16, #tpu.memory_space<vmem>>, vector<3200x128xbf16>
    %cst = arith.constant dense<0.000000e+00> : vector<8x128xf32>
    %3 = tpu.matmul %1, %2, %cst {dimension_numbers = #tpu.dot_dimension_numbers<[1], [0], [0], [1], [0, 0, 1, 1], [], []>} : vector<8x3200xbf16>, vector<3200x128xbf16>, vector<8x128xf32> -> vector<8x128xf32>
    %c0_3 = arith.constant 0 : index
    %c0_4 = arith.constant 0 : index
    %4 = vector.load %arg3[%c0_3, %c0_4] : memref<1x128xf32, #tpu.memory_space<vmem>>, vector<1x128xf32>
    %5 = vector.broadcast %4 : vector<1x128xf32> to vector<8x128xf32>
    %6 = arith.addf %3, %5 : vector<8x128xf32>
    %cst_5 = arith.constant dense<0xFF800000> : vector<8xf32>
    %7 = vector.multi_reduction <maximumf>, %6, %cst_5 [1] : vector<8x128xf32> to vector<8xf32>
    %8 = vector.shape_cast %7 : vector<8xf32> to vector<8x1xf32>
    %9 = vector.broadcast %8 : vector<8x1xf32> to vector<8x128xf32>
    %10 = arith.subf %6, %9 : vector<8x128xf32>
    %11 = math.exp %10 : vector<8x128xf32>
    %cst_6 = arith.constant dense<0.000000e+00> : vector<8xf32>
    %12 = vector.multi_reduction <add>, %11, %cst_6 [1] : vector<8x128xf32> to vector<8xf32>
    %13 = vector.shape_cast %12 : vector<8xf32> to vector<8x1xf32>
    %14 = tpu.reciprocal %13 {approx = true} : vector<8x1xf32> -> vector<8x1xf32>
    %15 = vector.broadcast %14 : vector<8x1xf32> to vector<8x128xf32>
    %16 = arith.mulf %11, %15 : vector<8x128xf32>
    %c0_7 = arith.constant 0 : index
    %c0_8 = arith.constant 0 : index
    %17 = vector.load %arg4[%c0_7, %c0_8] : memref<8x128xf32, #tpu.memory_space<vmem>>, vector<8x128xf32>
    tpu.vector_store %arg4[%c0_7, %c0_8], %16 {strides = array<i32>} : memref<8x128xf32, #tpu.memory_space<vmem>>, vector<8x128xf32>,
    return
  }
  func.func @transform_0(%arg0: i32) -> (i32, i32) {
    %c0_i32 = arith.constant 0 : i32
    %c0_i32_0 = arith.constant 0 : i32
    return %arg0, %c0_i32 : i32, i32
  }
  func.func @transform_1(%arg0: i32) -> (i32, i32) {
    %c0_i32 = arith.constant 0 : i32
    %c0_i32_0 = arith.constant 0 : i32
    %c0_i32_1 = arith.constant 0 : i32
    return %c0_i32, %c0_i32_0 : i32, i32
  }
  func.func @transform_2(%arg0: i32) -> (i32, i32) {
    %c0_i32 = arith.constant 0 : i32
    %c0_i32_0 = arith.constant 0 : i32
    %c0_i32_1 = arith.constant 0 : i32
    return %c0_i32, %c0_i32_0 : i32, i32
  }
  func.func @transform_3(%arg0: i32) -> (i32, i32) {
    %c0_i32 = arith.constant 0 : i32
    %c0_i32_0 = arith.constant 0 : i32
    return %arg0, %c0_i32 : i32, i32
  }
}

</mosaic_0001>

<bundles_post_ra>
// kernel: mlp_forward.1
= control target key start
LH: loop header
LB: loop body
LE: loop exit
PB: predicated region body
PF: predicated region fallthrough
CT: control target
= control target key end

     0   :  { %8 = vsyncpa [#allocation3], 0  ;;  %s3112_s0 = inlined_call_operand.vmem [shape: f32[8,3200], index: 0, kind: input, shape index: {}]   ;;  %s3113_s1 = inlined_call_operand.hbm [shape: bf16[3200,128], index: 1, kind: input, shape index: {}]   ;;  %s3114_s2 = inlined_call_operand.vmem [shape: f32[1,128], index: 2, kind: input, shape index: {}]   ;;  %s3115_s3 = inlined_call_operand.hbm [shape: f32[8,128], index: 3, kind: output, shape index: {}]  }
   0x1   :  { %9 = vsyncpa [#allocation4], 0  ;;  %s2984_s12 = smov [#allocation2]   ;;  %s2936_s16 = scalar_lea.hbm %s3113_s1, 25600 }
   0x2   :  { %s17_s13 = sshll.u32 %s2984_s12, 4  ;;  %p2937_p0 = scmp.ne.s32.totalorder %s3113_s1, %s2936_s16  ;;  %s18_s13 = int_to_ptr.vmem [resolvable:$true] %s17_s13 }
   0x3   :  { %p2940_p1 = scmp.lt.u32.totalorder %s2936_s16, %s3113_s1 }
   0x5   :  { %p2942_p2 = pnand %p2940_p1, %p2937_p0 }
   0x7   :  { %2945 = shalt.err (!%p2942_p2)
}
   0x8   :  { %s2946_s21 = scalar_lea.vmem %s18_s13, 25600  ;;  %p2951_p4 = scmp.lt.s32.totalorder %s18_s13, %s18_s13 }
   0x9   :  { %p2947_p3 = scmp.ne.s32.totalorder %s18_s13, %s2946_s21  ;;  %p2952_p5 = scmp.lt.s32.totalorder %s2946_s21, %s2946_s21 }
   0xb   :  { %p2953_p6 = por %p2952_p5, %p2951_p4 }
   0xd   :  { %p2954_p7 = pnand %p2953_p6, %p2947_p3 }
   0xf   :  { %2957 = shalt.err (!%p2954_p7)
}
  0x10   :  { %s2985_s22 = smov 64   ;;  %s2986_s23 = smov 4  }
  0x11   :  { %23 = dma.hbm_to_vmem [thread:$0]  %s3113_s1, 25600, %s18_s13, [#allocation3], %s2985_s22, %s2985_s22, %s2986_s23  }
  0x12   :  { %2980 = dma.done.wait [#allocation3], 25600  }
  0x13   :  { %2981 = vsyncadd [#allocation3], 4294941696  ;;  %v2732_v0 = vld [vmem:[#allocation2 + $0x40] sm:$0xff]   ;;  %v2736_v4 = vld [vmem:[#allocation2 + $0x48] sm:$0xff]   ;;  %vm2988_vm0 = vmmov 0  }
  0x14   :  { %v2733_v1 = vld [vmem:[#allocation2] sm:$0xff]   ;;  %2433 = vmatprep.subr.bf16.mxu0 %v2732_v0  ;;  %v2737_v5 = vld [vmem:[#allocation2 + $0x8] sm:$0xff]   ;;  %v2740_v8 = vld [vmem:[#allocation2 + $0x50] sm:$0xff]  }
  0x15   :  { %v2734_v2 = vld [vmem:[#allocation2 + $0xc0] sm:$0xff]   ;;  %2434 = vmatpush3.bf16.msra.mxu0 %v2733_v1  ;;  %v2738_v6 = vld [vmem:[#allocation2 + $0xc8] sm:$0xff]   ;;  %v2741_v9 = vld [vmem:[#allocation2 + $0x10] sm:$0xff]  }
  0x16   :  { %v2735_v3 = vld [vmem:[#allocation2 + $0x80] sm:$0xff]   ;;  %2455 = vmatprep.subr.bf16.mxu1 %v2734_v2  ;;  %2435 = vmatprep.subr.bf16.mxu0 %v2736_v4  ;;  %v2739_v7 = vld [vmem:[#allocation2 + $0x88] sm:$0xff]   ;;  %v2742_v10 = vld [vmem:[#allocation2 + $0xd0] sm:$0xff]  }
  0x17   :  { %2456 = vmatpush3.bf16.msra.mxu1 %v2735_v3  ;;  %v2743_v11 = vld [vmem:[#allocation2 + $0x90] sm:$0xff]   ;;  %v2744_v12 = vld [vmem:[#allocation2 + $0x58] sm:$0xff]   ;;  %v2748_v16 = vld [vmem:[#allocation2 + $0x60] sm:$0xff]  }
  0x18   :  { %2457 = vmatprep.subr.bf16.mxu1 %v2738_v6  ;;  %v2745_v13 = vld [vmem:[#allocation2 + $0x18] sm:$0xff]   ;;  %v2749_v17 = vld [vmem:[#allocation2 + $0x20] sm:$0xff]   ;;  %v2752_v20 = vld [vmem:[#allocation2 + $0x68] sm:$0xff]  }
  0x19   :  { %2436 = vmatpush3.bf16.msra.mxu0 %v2737_v5  ;;  %v2746_v14 = vld [vmem:[#allocation2 + $0xd8] sm:$0xff]   ;;  %v2750_v18 = vld [vmem:[#allocation2 + $0xe0] sm:$0xff]   ;;  %v2753_v21 = vld [vmem:[#allocation2 + $0x28] sm:$0xff]  }
  0x1a   :  { %2437 = vmatprep.subr.bf16.mxu0 %v2740_v8  ;;  %v2747_v15 = vld [vmem:[#allocation2 + $0x98] sm:$0xff]   ;;  %v2751_v19 = vld [vmem:[#allocation2 + $0xa0] sm:$0xff]   ;;  %v2754_v22 = vld [vmem:[#allocation2 + $0xe8] sm:$0xff]  }
  0x1b   :  { %2458 = vmatpush3.bf16.msra.mxu1 %v2739_v7  ;;  %v2755_v23 = vld [vmem:[#allocation2 + $0xa8] sm:$0xff]   ;;  %v2756_v24 = vld [vmem:[#allocation2 + $0x70] sm:$0xff]   ;;  %v2760_v28 = vld [vmem:[#allocation2 + $0x78] sm:$0xff]  }
  0x1c   :  { %2459 = vmatprep.subr.bf16.mxu1 %v2742_v10  ;;  %v2757_v25 = vld [vmem:[#allocation2 + $0x30] sm:$0xff]   ;;  %v2761_v29 = vld [vmem:[#allocation2 + $0x38] sm:$0xff]   ;;  %v31_v31 = vld [vmem:[%s3112_s0 + $0x8] sm:$0xff] }
  0x1d   :  { %2438 = vmatpush3.bf16.msra.mxu0 %v2741_v9  ;;  %v2758_v26 = vld [vmem:[#allocation2 + $0xf0] sm:$0xff]   ;;  %v2762_v30 = vld [vmem:[#allocation2 + $0xf8] sm:$0xff]   ;;  %v56_v32 = vpack.c.bf16 %v31_v31, %v31_v31  ;;  %v30_v34 = vld [vmem:[%s3112_s0] sm:$0xff] }
  0x1e   :  { %2439 = vmatprep.subr.bf16.mxu0 %v2744_v12  ;;  %v2759_v27 = vld [vmem:[#allocation2 + $0xb0] sm:$0xff]   ;;  %v2763_v33 = vld [vmem:[#allocation2 + $0xb8] sm:$0xff]   ;;  %v55_v35 = vpack.c.bf16 %v30_v34, %v30_v34  ;;  %v2764_v36 = vld [vmem:[#allocation2 + $0x140] sm:$0xff]  }
  0x1f   :  { %2460 = vmatpush3.bf16.msra.mxu1 %v2743_v11  ;;  %v33_v37 = vld [vmem:[%s3112_s0 + $0x18] sm:$0xff]  ;;  %1719 = vmatprep.mubr.bf16.mxu0 %v56_v32  ;;  %v2765_v39 = vld [vmem:[#allocation2 + $0x100] sm:$0xff]   ;;  %v32_v40 = vld [vmem:[%s3112_s0 + $0x10] sm:$0xff] }
  0x20   :  { %2461 = vmatprep.subr.bf16.mxu1 %v2746_v14  ;;  %v58_v38 = vpack.c.bf16 %v33_v37, %v33_v37  ;;  %v57_v41 = vpack.c.bf16 %v32_v40, %v32_v40  ;;  %v2766_v42 = vld [vmem:[#allocation2 + $0x1c0] sm:$0xff]   ;;  %v2768_v44 = vld [vmem:[#allocation2 + $0x148] sm:$0xff]   ;;  %v2772_v48 = vld [vmem:[#allocation2 + $0x150] sm:$0xff]  }
  0x21   :  { %2440 = vmatpush3.bf16.msra.mxu0 %v2745_v13  ;;  %v2767_v43 = vld [vmem:[#allocation2 + $0x180] sm:$0xff]   ;;  %v2769_v45 = vld [vmem:[#allocation2 + $0x108] sm:$0xff]   ;;  %v2773_v49 = vld [vmem:[#allocation2 + $0x110] sm:$0xff]  }
  0x22   :  { %2441 = vmatprep.subr.bf16.mxu0 %v2748_v16  ;;  %1759 = vmatprep.mubr.bf16.mxu1 %v58_v38  ;;  %v2770_v46 = vld [vmem:[#allocation2 + $0x1c8] sm:$0xff]   ;;  %v2774_v50 = vld [vmem:[#allocation2 + $0x1d0] sm:$0xff]   ;;  %v2776_v52 = vld [vmem:[#allocation2 + $0x158] sm:$0xff]  }
  0x23   :  { %2462 = vmatpush3.bf16.msra.mxu1 %v2747_v15  ;;  %v2771_v47 = vld [vmem:[#allocation2 + $0x188] sm:$0xff]   ;;  %v2775_v51 = vld [vmem:[#allocation2 + $0x190] sm:$0xff]   ;;  %v2777_v53 = vld [vmem:[#allocation2 + $0x118] sm:$0xff]  }
  0x24   :  { %2463 = vmatprep.subr.bf16.mxu1 %v2750_v18  ;;  %v2778_v54 = vld [vmem:[#allocation2 + $0x1d8] sm:$0xff]   ;;  %v2780_v56 = vld [vmem:[#allocation2 + $0x160] sm:$0xff]   ;;  %v2784_v60 = vld [vmem:[#allocation2 + $0x168] sm:$0xff]  }
  0x25   :  { %2442 = vmatpush3.bf16.msra.mxu0 %v2749_v17  ;;  %v2779_v55 = vld [vmem:[#allocation2 + $0x198] sm:$0xff]   ;;  %v2781_v57 = vld [vmem:[#allocation2 + $0x120] sm:$0xff]   ;;  %v2785_v61 = vld [vmem:[#allocation2 + $0x128] sm:$0xff]  }
  0x26   :  { %2443 = vmatprep.subr.bf16.mxu0 %v2752_v20  ;;  %v2782_v58 = vld [vmem:[#allocation2 + $0x1e0] sm:$0xff]   ;;  %v2786_v62 = vld [vmem:[#allocation2 + $0x1e8] sm:$0xff]   ;;  %v2788_v0 = vld [vmem:[#allocation2 + $0x170] sm:$0xff]  }
  0x27   :  { %2464 = vmatpush3.bf16.msra.mxu1 %v2751_v19  ;;  %v2783_v59 = vld [vmem:[#allocation2 + $0x1a0] sm:$0xff]   ;;  %v2787_v63 = vld [vmem:[#allocation2 + $0x1a8] sm:$0xff]   ;;  %v2789_v1 = vld [vmem:[#allocation2 + $0x130] sm:$0xff]  }
  0x28   :  { %2465 = vmatprep.subr.bf16.mxu1 %v2754_v22  ;;  %v2790_v2 = vld [vmem:[#allocation2 + $0x1f0] sm:$0xff]   ;;  %v2792_v4 = vld [vmem:[#allocation2 + $0x178] sm:$0xff]   ;;  %v35_v7 = vld [vmem:[%s3112_s0 + $0x28] sm:$0xff] }
  0x29   :  { %2444 = vmatpush3.bf16.msra.mxu0 %v2753_v21  ;;  %v2791_v3 = vld [vmem:[#allocation2 + $0x1b0] sm:$0xff]   ;;  %v2793_v5 = vld [vmem:[#allocation2 + $0x138] sm:$0xff]   ;;  %v60_v8 = vpack.c.bf16 %v35_v7, %v35_v7  ;;  %v34_v10 = vld [vmem:[%s3112_s0 + $0x20] sm:$0xff] }
  0x2a   :  { %2445 = vmatprep.subr.bf16.mxu0 %v2756_v24  ;;  %v2794_v6 = vld [vmem:[#allocation2 + $0x1f8] sm:$0xff]   ;;  %v59_v11 = vpack.c.bf16 %v34_v10, %v34_v10  ;;  %v2796_v12 = vld [vmem:[#allocation2 + $0x240] sm:$0xff]   ;;  %v36_v16 = vld [vmem:[%s3112_s0 + $0x30] sm:$0xff] }
  0x2b   :  { %2466 = vmatpush3.bf16.msra.mxu1 %v2755_v23  ;;  %v2795_v9 = vld [vmem:[#allocation2 + $0x1b8] sm:$0xff]   ;;  %v2797_v15 = vld [vmem:[#allocation2 + $0x200] sm:$0xff]   ;;  %v61_v17 = vpack.c.bf16 %v36_v16, %v36_v16  ;;  %v2800_v20 = vld [vmem:[#allocation2 + $0x248] sm:$0xff]  }
  0x2c   :  { %2467 = vmatprep.subr.bf16.mxu1 %v2758_v26  ;;  %v37_v13 = vld [vmem:[%s3112_s0 + $0x38] sm:$0xff]  ;;  %v2798_v18 = vld [vmem:[#allocation2 + $0x2c0] sm:$0xff]   ;;  %v2801_v21 = vld [vmem:[#allocation2 + $0x208] sm:$0xff]  }
  0x2d   :  { %2446 = vmatpush3.bf16.msra.mxu0 %v2757_v25  ;;  %v62_v14 = vpack.c.bf16 %v37_v13, %v37_v13  ;;  %v2799_v19 = vld [vmem:[#allocation2 + $0x280] sm:$0xff]   ;;  %v2802_v22 = vld [vmem:[#allocation2 + $0x2c8] sm:$0xff]   ;;  %v2804_v24 = vld [vmem:[#allocation2 + $0x250] sm:$0xff]  }
  0x2e   :  { %2447 = vmatprep.subr.bf16.mxu0 %v2760_v28  ;;  %v2803_v23 = vld [vmem:[#allocation2 + $0x288] sm:$0xff]   ;;  %v2805_v25 = vld [vmem:[#allocation2 + $0x210] sm:$0xff]   ;;  %v2808_v28 = vld [vmem:[#allocation2 + $0x258] sm:$0xff]  }
  0x2f   :  { %2468 = vmatpush3.bf16.msra.mxu1 %v2759_v27  ;;  %v2806_v26 = vld [vmem:[#allocation2 + $0x2d0] sm:$0xff]   ;;  %v2811_v31 = vld [vmem:[#allocation2 + $0x298] sm:$0xff]   ;;  %v2812_v32 = vld [vmem:[#allocation2 + $0x260] sm:$0xff]  }
  0x30   :  { %2469 = vmatprep.subr.bf16.mxu1 %v2762_v30  ;;  %v2807_v27 = vld [vmem:[#allocation2 + $0x290] sm:$0xff]   ;;  %v2810_v30 = vld [vmem:[#allocation2 + $0x2d8] sm:$0xff]   ;;  %v2814_v34 = vld [vmem:[#allocation2 + $0x2e0] sm:$0xff]  }
  0x31   :  { %2448 = vmatpush3.bf16.msra.mxu0 %v2761_v29  ;;  %v2809_v29 = vld [vmem:[#allocation2 + $0x218] sm:$0xff]   ;;  %v2817_v37 = vld [vmem:[#allocation2 + $0x228] sm:$0xff]   ;;  %v2820_v40 = vld [vmem:[#allocation2 + $0x270] sm:$0xff]  }
  0x32   :  { %2477 = vmatprep.subr.bf16.mxu0 %v2764_v36  ;;  %v2816_v36 = vld [vmem:[#allocation2 + $0x268] sm:$0xff]   ;;  %v2843_v7 = vld [vmem:[#allocation2 + $0x398] sm:$0xff]   ;;  %v2846_v10 = vld [vmem:[#allocation2 + $0x3e0] sm:$0xff]  }
  0x33   :  { %2470 = vmatpush3.bf16.msra.mxu1 %v2763_v33  ;;  %v2813_v33 = vld [vmem:[#allocation2 + $0x220] sm:$0xff]   ;;  %v2818_v38 = vld [vmem:[#allocation2 + $0x2e8] sm:$0xff]   ;;  %v2852_v16 = vld [vmem:[#allocation2 + $0x370] sm:$0xff]  }
  0x34   :  { %1720 = vmatmul.mubr.bf16.vlgmr.msra.gmra.mrb[0].mxu0 %v55_v35  ;;  %2499 = vmatprep.subr.bf16.mxu1 %v2766_v42  ;;  %v2815_v35 = vld [vmem:[#allocation2 + $0x2a0] sm:$0xff]   ;;  %v2822_v42 = vld [vmem:[#allocation2 + $0x2f0] sm:$0xff]   ;;  %v2849_v13 = vld [vmem:[#allocation2 + $0x328] sm:$0xff]  }
  0x35   :  { %2478 = vmatpush3.bf16.msra.mxu0 %v2765_v39  ;;  %1799 = vmatprep.mubr.bf16.mxu0 %v60_v8  ;;  %v2819_v39 = vld [vmem:[#allocation2 + $0x2a8] sm:$0xff]   ;;  %v2844_v8 = vld [vmem:[#allocation2 + $0x360] sm:$0xff]  }
  0x36   :  { %1760 = vmatmul.mubr.bf16.vlgmr.msra.gmra.mrb[0].mxu1 %v57_v41  ;;  %2479 = vmatprep.subr.bf16.mxu0 %v2768_v44  ;;  %v2821_v41 = vld [vmem:[#allocation2 + $0x230] sm:$0xff]   ;;  %v2824_v44 = vld [vmem:[#allocation2 + $0x278] sm:$0xff]  }
  0x37   :  { %2500 = vmatpush3.bf16.msra.mxu1 %v2767_v43  ;;  %1839 = vmatprep.mubr.bf16.mxu1 %v62_v14  ;;  %v2823_v43 = vld [vmem:[#allocation2 + $0x2b0] sm:$0xff]   ;;  %v2850_v14 = vld [vmem:[#allocation2 + $0x3e8] sm:$0xff]  }
  0x38   :  { %2501 = vmatprep.subr.bf16.mxu1 %v2770_v46  ;;  %v2826_v46 = vld [vmem:[#allocation2 + $0x2f8] sm:$0xff]  }
  0x39   :  { %2480 = vmatpush3.bf16.msra.mxu0 %v2769_v45  ;;  %v2825_v45 = vld [vmem:[#allocation2 + $0x238] sm:$0xff]  }
  0x3a   :  { %2481 = vmatprep.subr.bf16.mxu0 %v2772_v48 }
  0x3b   :  { %2502 = vmatpush3.bf16.msra.mxu1 %v2771_v47  ;;  %v39_v47 = vld [vmem:[%s3112_s0 + $0x48] sm:$0xff] }
  0x3c   :  { %2503 = vmatprep.subr.bf16.mxu1 %v2774_v50  ;;  %v64_v48 = vpack.c.bf16 %v39_v47, %v39_v47  ;;  %v38_v50 = vld [vmem:[%s3112_s0 + $0x40] sm:$0xff]  ;;  %v2875_v47 = vld [vmem:[#allocation2 + $0x498] sm:$0xff]  }
  0x3d   :  { %2482 = vmatpush3.bf16.msra.mxu0 %v2773_v49  ;;  %v2827_v49 = vld [vmem:[#allocation2 + $0x2b8] sm:$0xff]  }
  0x3e   :  { %2483 = vmatprep.subr.bf16.mxu0 %v2776_v52  ;;  %v2828_v52 = vld [vmem:[#allocation2 + $0x340] sm:$0xff]  }
  0x3f   :  { %2504 = vmatpush3.bf16.msra.mxu1 %v2775_v51  ;;  %v63_v51 = vpack.c.bf16 %v38_v50, %v38_v50  ;;  %v2878_v50 = vld [vmem:[#allocation2 + $0x4e0] sm:$0xff]  }
  0x40   :  { %2505 = vmatprep.subr.bf16.mxu1 %v2778_v54 }
  0x41   :  { %2484 = vmatpush3.bf16.msra.mxu0 %v2777_v53  ;;  %v41_v53 = vld [vmem:[%s3112_s0 + $0x58] sm:$0xff] }
  0x42   :  { %2485 = vmatprep.subr.bf16.mxu0 %v2780_v56  ;;  %v66_v54 = vpack.c.bf16 %v41_v53, %v41_v53  ;;  %v40_v56 = vld [vmem:[%s3112_s0 + $0x50] sm:$0xff]  ;;  %v2881_v53 = vld [vmem:[#allocation2 + $0x428] sm:$0xff]  }
  0x43   :  { %2506 = vmatpush3.bf16.msra.mxu1 %v2779_v55  ;;  %v2829_v55 = vld [vmem:[#allocation2 + $0x300] sm:$0xff]  }
  0x44   :  { %2507 = vmatprep.subr.bf16.mxu1 %v2782_v58  ;;  %v2830_v58 = vld [vmem:[#allocation2 + $0x3c0] sm:$0xff]  }
  0x45   :  { %2486 = vmatpush3.bf16.msra.mxu0 %v2781_v57  ;;  %v65_v57 = vpack.c.bf16 %v40_v56, %v40_v56  ;;  %v2884_v56 = vld [vmem:[#allocation2 + $0x470] sm:$0xff]  }
  0x46   :  { %2487 = vmatprep.subr.bf16.mxu0 %v2784_v60  ;;  %v2832_v60 = vld [vmem:[#allocation2 + $0x348] sm:$0xff]  }
  0x47   :  { %2508 = vmatpush3.bf16.msra.mxu1 %v2783_v59  ;;  %v2831_v59 = vld [vmem:[#allocation2 + $0x380] sm:$0xff]  }
  0x48   :  { %2509 = vmatprep.subr.bf16.mxu1 %v2786_v62  ;;  %v2834_v62 = vld [vmem:[#allocation2 + $0x3c8] sm:$0xff]  }
  0x49   :  { %2488 = vmatpush3.bf16.msra.mxu0 %v2785_v61  ;;  %v2833_v61 = vld [vmem:[#allocation2 + $0x308] sm:$0xff]  }
  0x4a   :  { %2489 = vmatprep.subr.bf16.mxu0 %v2788_v0  ;;  %v2836_v0 = vld [vmem:[#allocation2 + $0x350] sm:$0xff]  }
  0x4b   :  { %2510 = vmatpush3.bf16.msra.mxu1 %v2787_v63  ;;  %v2835_v63 = vld [vmem:[#allocation2 + $0x388] sm:$0xff]  }
  0x4c   :  { %2511 = vmatprep.subr.bf16.mxu1 %v2790_v2  ;;  %v2838_v2 = vld [vmem:[#allocation2 + $0x3d0] sm:$0xff]  }
  0x4d   :  { %2490 = vmatpush3.bf16.msra.mxu0 %v2789_v1  ;;  %v2837_v1 = vld [vmem:[#allocation2 + $0x310] sm:$0xff]  }
  0x4e   :  { %2491 = vmatprep.subr.bf16.mxu0 %v2792_v4  ;;  %v2840_v4 = vld [vmem:[#allocation2 + $0x358] sm:$0xff]  }
  0x4f   :  { %2512 = vmatpush3.bf16.msra.mxu1 %v2791_v3  ;;  %v2839_v3 = vld [vmem:[#allocation2 + $0x390] sm:$0xff]  }
  0x50   :  { %2513 = vmatprep.subr.bf16.mxu1 %v2794_v6  ;;  %v2842_v6 = vld [vmem:[#allocation2 + $0x3d8] sm:$0xff]  }
  0x51   :  { %2492 = vmatpush3.bf16.msra.mxu0 %v2793_v5  ;;  %v2841_v5 = vld [vmem:[#allocation2 + $0x318] sm:$0xff]  }
  0x52   :  { %2521 = vmatprep.subr.bf16.mxu0 %v2796_v12  ;;  %v2848_v12 = vld [vmem:[#allocation2 + $0x368] sm:$0xff]  }
  0x53   :  { %2514 = vmatpush3.bf16.msra.mxu1 %v2795_v9  ;;  %v2845_v9 = vld [vmem:[#allocation2 + $0x320] sm:$0xff]  }
  0x54   :  { %1800 = vmatmul.mubr.bf16.vlgmr.msra.gmra.mrb[4].mxu0 %v59_v11  ;;  %2543 = vmatprep.subr.bf16.mxu1 %v2798_v18  ;;  %v2847_v11 = vld [vmem:[#allocation2 + $0x3a0] sm:$0xff]   ;;  %v2854_v18 = vld [vmem:[#allocation2 + $0x3f0] sm:$0xff]  }
  0x55   :  { %2522 = vmatpush3.bf16.msra.mxu0 %v2797_v15  ;;  %1879 = vmatprep.mubr.bf16.mxu0 %v64_v48  ;;  %v2851_v15 = vld [vmem:[#allocation2 + $0x3a8] sm:$0xff]   ;;  %v2876_v48 = vld [vmem:[#allocation2 + $0x460] sm:$0xff]  }
  0x56   :  { %1840 = vmatmul.mubr.bf16.vlgmr.msra.gmra.mrb[4].mxu1 %v61_v17  ;;  %2523 = vmatprep.subr.bf16.mxu0 %v2800_v20  ;;  %v2853_v17 = vld [vmem:[#allocation2 + $0x330] sm:$0xff]   ;;  %v2856_v20 = vld [vmem:[#allocation2 + $0x378] sm:$0xff]  }
  0x57   :  { %2544 = vmatpush3.bf16.msra.mxu1 %v2799_v19  ;;  %1919 = vmatprep.mubr.bf16.mxu1 %v66_v54  ;;  %v2855_v19 = vld [vmem:[#allocation2 + $0x3b0] sm:$0xff]   ;;  %v2882_v54 = vld [vmem:[#allocation2 + $0x4e8] sm:$0xff]  }
  0x58   :  { %2545 = vmatprep.subr.bf16.mxu1 %v2802_v22  ;;  %v2858_v22 = vld [vmem:[#allocation2 + $0x3f8] sm:$0xff]  }
  0x59   :  { %2524 = vmatpush3.bf16.msra.mxu0 %v2801_v21  ;;  %v2857_v21 = vld [vmem:[#allocation2 + $0x338] sm:$0xff]  }
  0x5a   :  { %2525 = vmatprep.subr.bf16.mxu0 %v2804_v24 }
  0x5b   :  { %2546 = vmatpush3.bf16.msra.mxu1 %v2803_v23  ;;  %v43_v23 = vld [vmem:[%s3112_s0 + $0x68] sm:$0xff] }
  0x5c   :  { %2547 = vmatprep.subr.bf16.mxu1 %v2806_v26  ;;  %v68_v24 = vpack.c.bf16 %v43_v23, %v43_v23  ;;  %v42_v26 = vld [vmem:[%s3112_s0 + $0x60] sm:$0xff]  ;;  %v2907_v23 = vld [vmem:[#allocation2 + $0x598] sm:$0xff]  }
  0x5d   :  { %2526 = vmatpush3.bf16.msra.mxu0 %v2805_v25  ;;  %v2859_v25 = vld [vmem:[#allocation2 + $0x3b8] sm:$0xff]  }
  0x5e   :  { %2527 = vmatprep.subr.bf16.mxu0 %v2808_v28  ;;  %v2860_v28 = vld [vmem:[#allocation2 + $0x440] sm:$0xff]  }
  0x5f   :  { %2548 = vmatpush3.bf16.msra.mxu1 %v2807_v27  ;;  %v67_v27 = vpack.c.bf16 %v42_v26, %v42_v26  ;;  %v2910_v26 = vld [vmem:[#allocation2 + $0x5e0] sm:$0xff]  }
  0x60   :  { %2549 = vmatprep.subr.bf16.mxu1 %v2810_v30 }
  0x61   :  { %2528 = vmatpush3.bf16.msra.mxu0 %v2809_v29  ;;  %v45_v29 = vld [vmem:[%s3112_s0 + $0x78] sm:$0xff] }
  0x62   :  { %2529 = vmatprep.subr.bf16.mxu0 %v2812_v32  ;;  %v70_v30 = vpack.c.bf16 %v45_v29, %v45_v29  ;;  %v44_v32 = vld [vmem:[%s3112_s0 + $0x70] sm:$0xff]  ;;  %v2913_v29 = vld [vmem:[#allocation2 + $0x528] sm:$0xff]  }
  0x63   :  { %2550 = vmatpush3.bf16.msra.mxu1 %v2811_v31  ;;  %v2861_v31 = vld [vmem:[#allocation2 + $0x400] sm:$0xff]  }
  0x64   :  { %2551 = vmatprep.subr.bf16.mxu1 %v2814_v34  ;;  %v2862_v34 = vld [vmem:[#allocation2 + $0x4c0] sm:$0xff]  }
  0x65   :  { %2530 = vmatpush3.bf16.msra.mxu0 %v2813_v33  ;;  %v69_v33 = vpack.c.bf16 %v44_v32, %v44_v32  ;;  %v2916_v32 = vld [vmem:[#allocation2 + $0x570] sm:$0xff]  }
  0x66   :  { %2531 = vmatprep.subr.bf16.mxu0 %v2816_v36  ;;  %v2864_v36 = vld [vmem:[#allocation2 + $0x448] sm:$0xff]  }
  0x67   :  { %2552 = vmatpush3.bf16.msra.mxu1 %v2815_v35  ;;  %v2863_v35 = vld [vmem:[#allocation2 + $0x480] sm:$0xff]  }
  0x68   :  { %2553 = vmatprep.subr.bf16.mxu1 %v2818_v38  ;;  %v2866_v38 = vld [vmem:[#allocation2 + $0x4c8] sm:$0xff]  }
  0x69   :  { %2532 = vmatpush3.bf16.msra.mxu0 %v2817_v37  ;;  %v2865_v37 = vld [vmem:[#allocation2 + $0x408] sm:$0xff]  }
  0x6a   :  { %2533 = vmatprep.subr.bf16.mxu0 %v2820_v40  ;;  %v2868_v40 = vld [vmem:[#allocation2 + $0x450] sm:$0xff]  }
  0x6b   :  { %2554 = vmatpush3.bf16.msra.mxu1 %v2819_v39  ;;  %v2867_v39 = vld [vmem:[#allocation2 + $0x488] sm:$0xff]  }
  0x6c   :  { %2555 = vmatprep.subr.bf16.mxu1 %v2822_v42  ;;  %v2870_v42 = vld [vmem:[#allocation2 + $0x4d0] sm:$0xff]  }
  0x6d   :  { %2534 = vmatpush3.bf16.msra.mxu0 %v2821_v41  ;;  %v2869_v41 = vld [vmem:[#allocation2 + $0x410] sm:$0xff]  }
  0x6e   :  { %2535 = vmatprep.subr.bf16.mxu0 %v2824_v44  ;;  %v2872_v44 = vld [vmem:[#allocation2 + $0x458] sm:$0xff]  }
  0x6f   :  { %2556 = vmatpush3.bf16.msra.mxu1 %v2823_v43  ;;  %v2871_v43 = vld [vmem:[#allocation2 + $0x490] sm:$0xff]  }
  0x70   :  { %2557 = vmatprep.subr.bf16.mxu1 %v2826_v46  ;;  %v2874_v46 = vld [vmem:[#allocation2 + $0x4d8] sm:$0xff]  }
  0x71   :  { %2536 = vmatpush3.bf16.msra.mxu0 %v2825_v45  ;;  %v2873_v45 = vld [vmem:[#allocation2 + $0x418] sm:$0xff]  }
  0x72   :  { %2565 = vmatprep.subr.bf16.mxu0 %v2828_v52  ;;  %v2880_v52 = vld [vmem:[#allocation2 + $0x468] sm:$0xff]  }
  0x73   :  { %2558 = vmatpush3.bf16.msra.mxu1 %v2827_v49  ;;  %v2877_v49 = vld [vmem:[#allocation2 + $0x420] sm:$0xff]  }
  0x74   :  { %1880 = vmatmul.mubr.bf16.vlgmr.msra.gmra.mrb[8].mxu0 %v63_v51  ;;  %2587 = vmatprep.subr.bf16.mxu1 %v2830_v58  ;;  %v2879_v51 = vld [vmem:[#allocation2 + $0x4a0] sm:$0xff]   ;;  %v2886_v58 = vld [vmem:[#allocation2 + $0x4f0] sm:$0xff]  }
  0x75   :  { %2566 = vmatpush3.bf16.msra.mxu0 %v2829_v55  ;;  %1959 = vmatprep.mubr.bf16.mxu0 %v68_v24  ;;  %v2883_v55 = vld [vmem:[#allocation2 + $0x4a8] sm:$0xff]   ;;  %v2908_v24 = vld [vmem:[#allocation2 + $0x560] sm:$0xff]  }
  0x76   :  { %1920 = vmatmul.mubr.bf16.vlgmr.msra.gmra.mrb[8].mxu1 %v65_v57  ;;  %2567 = vmatprep.subr.bf16.mxu0 %v2832_v60  ;;  %v2885_v57 = vld [vmem:[#allocation2 + $0x430] sm:$0xff]   ;;  %v2888_v60 = vld [vmem:[#allocation2 + $0x478] sm:$0xff]  }
  0x77   :  { %2588 = vmatpush3.bf16.msra.mxu1 %v2831_v59  ;;  %1999 = vmatprep.mubr.bf16.mxu1 %v70_v30  ;;  %v2887_v59 = vld [vmem:[#allocation2 + $0x4b0] sm:$0xff]   ;;  %v2914_v30 = vld [vmem:[#allocation2 + $0x5e8] sm:$0xff]  }
  0x78   :  { %2589 = vmatprep.subr.bf16.mxu1 %v2834_v62  ;;  %v2890_v62 = vld [vmem:[#allocation2 + $0x4f8] sm:$0xff]  }
  0x79   :  { %2568 = vmatpush3.bf16.msra.mxu0 %v2833_v61  ;;  %v2889_v61 = vld [vmem:[#allocation2 + $0x438] sm:$0xff]  }
  0x7a   :  { %2569 = vmatprep.subr.bf16.mxu0 %v2836_v0 }
  0x7b   :  { %2590 = vmatpush3.bf16.msra.mxu1 %v2835_v63  ;;  %v47_v63 = vld [vmem:[%s3112_s0 + $0x88] sm:$0xff] }
  0x7c   :  { %2591 = vmatprep.subr.bf16.mxu1 %v2838_v2  ;;  %v72_v0 = vpack.c.bf16 %v47_v63, %v47_v63  ;;  %v46_v2 = vld [vmem:[%s3112_s0 + $0x80] sm:$0xff] }
  0x7d   :  { %2570 = vmatpush3.bf16.msra.mxu0 %v2837_v1  ;;  %v2891_v1 = vld [vmem:[#allocation2 + $0x4b8] sm:$0xff]  }
  0x7e   :  { %2571 = vmatprep.subr.bf16.mxu0 %v2840_v4  ;;  %v2892_v4 = vld [vmem:[#allocation2 + $0x540] sm:$0xff]  }
  0x7f   :  { %2592 = vmatpush3.bf16.msra.mxu1 %v2839_v3  ;;  %v71_v3 = vpack.c.bf16 %v46_v2, %v46_v2 }
  0x80   :  { %2593 = vmatprep.subr.bf16.mxu1 %v2842_v6 }
  0x81   :  { %2572 = vmatpush3.bf16.msra.mxu0 %v2841_v5  ;;  %v49_v5 = vld [vmem:[%s3112_s0 + $0x98] sm:$0xff] }
  0x82   :  { %2573 = vmatprep.subr.bf16.mxu0 %v2844_v8  ;;  %v74_v6 = vpack.c.bf16 %v49_v5, %v49_v5  ;;  %v48_v8 = vld [vmem:[%s3112_s0 + $0x90] sm:$0xff] }
  0x83   :  { %2594 = vmatpush3.bf16.msra.mxu1 %v2843_v7  ;;  %v2893_v7 = vld [vmem:[#allocation2 + $0x500] sm:$0xff]  }
  0x84   :  { %2595 = vmatprep.subr.bf16.mxu1 %v2846_v10  ;;  %v2894_v10 = vld [vmem:[#allocation2 + $0x5c0] sm:$0xff]  }
  0x85   :  { %2574 = vmatpush3.bf16.msra.mxu0 %v2845_v9  ;;  %v73_v9 = vpack.c.bf16 %v48_v8, %v48_v8 }
  0x86   :  { %2575 = vmatprep.subr.bf16.mxu0 %v2848_v12  ;;  %v2896_v12 = vld [vmem:[#allocation2 + $0x548] sm:$0xff]  }
  0x87   :  { %2596 = vmatpush3.bf16.msra.mxu1 %v2847_v11  ;;  %v2895_v11 = vld [vmem:[#allocation2 + $0x580] sm:$0xff]  }
  0x88   :  { %2597 = vmatprep.subr.bf16.mxu1 %v2850_v14  ;;  %v2898_v14 = vld [vmem:[#allocation2 + $0x5c8] sm:$0xff]  }
  0x89   :  { %2576 = vmatpush3.bf16.msra.mxu0 %v2849_v13  ;;  %v2897_v13 = vld [vmem:[#allocation2 + $0x508] sm:$0xff]  }
  0x8a   :  { %2577 = vmatprep.subr.bf16.mxu0 %v2852_v16  ;;  %v2900_v16 = vld [vmem:[#allocation2 + $0x550] sm:$0xff]  }
  0x8b   :  { %2598 = vmatpush3.bf16.msra.mxu1 %v2851_v15  ;;  %v2899_v15 = vld [vmem:[#allocation2 + $0x588] sm:$0xff]  }
  0x8c   :  { %2599 = vmatprep.subr.bf16.mxu1 %v2854_v18  ;;  %v2902_v18 = vld [vmem:[#allocation2 + $0x5d0] sm:$0xff]  }
  0x8d   :  { %2578 = vmatpush3.bf16.msra.mxu0 %v2853_v17  ;;  %v2901_v17 = vld [vmem:[#allocation2 + $0x510] sm:$0xff]  }
  0x8e   :  { %2579 = vmatprep.subr.bf16.mxu0 %v2856_v20  ;;  %v2904_v20 = vld [vmem:[#allocation2 + $0x558] sm:$0xff]  }
  0x8f   :  { %2600 = vmatpush3.bf16.msra.mxu1 %v2855_v19  ;;  %v2903_v19 = vld [vmem:[#allocation2 + $0x590] sm:$0xff]  }
  0x90   :  { %2601 = vmatprep.subr.bf16.mxu1 %v2858_v22  ;;  %v2906_v22 = vld [vmem:[#allocation2 + $0x5d8] sm:$0xff]  }
  0x91   :  { %2580 = vmatpush3.bf16.msra.mxu0 %v2857_v21  ;;  %v2905_v21 = vld [vmem:[#allocation2 + $0x518] sm:$0xff]  }
  0x92   :  { %2609 = vmatprep.subr.bf16.mxu0 %v2860_v28  ;;  %v2912_v28 = vld [vmem:[#allocation2 + $0x568] sm:$0xff]  }
  0x93   :  { %2602 = vmatpush3.bf16.msra.mxu1 %v2859_v25  ;;  %v2909_v25 = vld [vmem:[#allocation2 + $0x520] sm:$0xff]  }
  0x94   :  { %1960 = vmatmul.mubr.bf16.vlgmr.msra.gmra.mrb[12].mxu0 %v67_v27  ;;  %2631 = vmatprep.subr.bf16.mxu1 %v2862_v34  ;;  %v2911_v27 = vld [vmem:[#allocation2 + $0x5a0] sm:$0xff]   ;;  %v2918_v34 = vld [vmem:[#allocation2 + $0x5f0] sm:$0xff]  }
  0x95   :  { %2610 = vmatpush3.bf16.msra.mxu0 %v2861_v31  ;;  %2039 = vmatprep.mubr.bf16.mxu0 %v72_v0  ;;  %v2915_v31 = vld [vmem:[#allocation2 + $0x5a8] sm:$0xff]  }
  0x96   :  { %2000 = vmatmul.mubr.bf16.vlgmr.msra.gmra.mrb[12].mxu1 %v69_v33  ;;  %2611 = vmatprep.subr.bf16.mxu0 %v2864_v36  ;;  %v2917_v33 = vld [vmem:[#allocation2 + $0x530] sm:$0xff]   ;;  %v2920_v36 = vld [vmem:[#allocation2 + $0x578] sm:$0xff]  }
  0x97   :  { %2632 = vmatpush3.bf16.msra.mxu1 %v2863_v35  ;;  %2079 = vmatprep.mubr.bf16.mxu1 %v74_v6  ;;  %v2919_v35 = vld [vmem:[#allocation2 + $0x5b0] sm:$0xff]  }
  0x98   :  { %2633 = vmatprep.subr.bf16.mxu1 %v2866_v38  ;;  %v2922_v38 = vld [vmem:[#allocation2 + $0x5f8] sm:$0xff]  }
  0x99   :  { %2612 = vmatpush3.bf16.msra.mxu0 %v2865_v37  ;;  %v2921_v37 = vld [vmem:[#allocation2 + $0x538] sm:$0xff]  }
  0x9a   :  { %2613 = vmatprep.subr.bf16.mxu0 %v2868_v40 }
  0x9b   :  { %2634 = vmatpush3.bf16.msra.mxu1 %v2867_v39  ;;  %v51_v39 = vld [vmem:[%s3112_s0 + $0xa8] sm:$0xff] }
  0x9c   :  { %2635 = vmatprep.subr.bf16.mxu1 %v2870_v42  ;;  %v76_v40 = vpack.c.bf16 %v51_v39, %v51_v39  ;;  %v50_v42 = vld [vmem:[%s3112_s0 + $0xa0] sm:$0xff] }
  0x9d   :  { %2614 = vmatpush3.bf16.msra.mxu0 %v2869_v41  ;;  %v2923_v41 = vld [vmem:[#allocation2 + $0x5b8] sm:$0xff]  }
  0x9e   :  { %2615 = vmatprep.subr.bf16.mxu0 %v2872_v44  ;;  %v53_v44 = vld [vmem:[%s3112_s0 + $0xb8] sm:$0xff] }
  0x9f   :  { %2636 = vmatpush3.bf16.msra.mxu1 %v2871_v43  ;;  %v2987_v43 = vmov 0.0  }
  0xa0   :  { %2637 = vmatprep.subr.bf16.mxu1 %v2874_v46  ;;  %v78_v46 = vpack.c.bf16 %v53_v44, %v53_v44 }
  0xa1   :  { %2616 = vmatpush3.bf16.msra.mxu0 %v2873_v45  ;;  %v75_v45 = vpack.c.bf16 %v50_v42, %v50_v42 }
  0xa2   :  { %2617 = vmatprep.subr.bf16.mxu0 %v2876_v48  ;;  %v52_v48 = vld [vmem:[%s3112_s0 + $0xb0] sm:$0xff] }
  0xa3   :  { %2638 = vmatpush3.bf16.msra.mxu1 %v2875_v47  ;;  %v2924_v47 = vld [vmem:[#allocation2 + $0x600] sm:$0xff]  }
  0xa4   :  { %2639 = vmatprep.subr.bf16.mxu1 %v2878_v50  ;;  %v2925_v50 = vld [vmem:[#allocation2 + $0x608] sm:$0xff]  }
  0xa5   :  { %2618 = vmatpush3.bf16.msra.mxu0 %v2877_v49  ;;  %v77_v49 = vpack.c.bf16 %v52_v48, %v52_v48 }
  0xa6   :  { %2619 = vmatprep.subr.bf16.mxu0 %v2880_v52  ;;  %v2927_v52 = vld [vmem:[#allocation2 + $0x618] sm:$0xff]  }
  0xa7   :  { %2640 = vmatpush3.bf16.msra.mxu1 %v2879_v51  ;;  %v2926_v51 = vld [vmem:[#allocation2 + $0x610] sm:$0xff]  }
  0xa8   :  { %2641 = vmatprep.subr.bf16.mxu1 %v2882_v54  ;;  %v2929_v54 = vld [vmem:[#allocation2 + $0x628] sm:$0xff]  }
  0xa9   :  { %2620 = vmatpush3.bf16.msra.mxu0 %v2881_v53  ;;  %v2928_v53 = vld [vmem:[#allocation2 + $0x620] sm:$0xff]  }
  0xaa   :  { %2621 = vmatprep.subr.bf16.mxu0 %v2884_v56  ;;  %v2931_v56 = vld [vmem:[#allocation2 + $0x638] sm:$0xff]  }
  0xab   :  { %2642 = vmatpush3.bf16.msra.mxu1 %v2883_v55  ;;  %v2930_v55 = vld [vmem:[#allocation2 + $0x630] sm:$0xff]  }
  0xac   :  { %2643 = vmatprep.subr.bf16.mxu1 %v2886_v58 }
  0xad   :  { %2622 = vmatpush3.bf16.msra.mxu0 %v2885_v57  ;;  %v54_v57 = vld [vmem:[%s3112_s0 + $0xc0] sm:$0xff]  ;;  %s2989_s0 = smov [#allocation5]  }
  0xae   :  { %2623 = vmatprep.subr.bf16.mxu0 %v2888_v60  ;;  %v79_v58 = vpack.c.bf16 %v54_v57, %v54_v57  ;;  %v2232_v60 = vld [vmem:[%s3114_s2] ss:$0 sm:$0xff]  ;;  %s2223_s2 = sshll.u32 %s2989_s0, 4  ;;  %s2224_s2 = int_to_ptr.vmem [resolvable:$true] %s2223_s2 }
  0xaf   :  { %2644 = vmatpush3.bf16.msra.mxu1 %v2887_v59  ;;  %s2958_s22 = scalar_lea.vmem %s2224_s2, 128  ;;  %p2963_p9 = scmp.lt.s32.totalorder %s2224_s2, %s2224_s2 }
  0xb0   :  { %2645 = vmatprep.subr.bf16.mxu1 %v2890_v62  ;;  %p2959_p8 = scmp.ne.s32.totalorder %s2224_s2, %s2958_s22  ;;  %p2964_p10 = scmp.lt.s32.totalorder %s2958_s22, %s2958_s22 }
  0xb1   :  { %2624 = vmatpush3.bf16.msra.mxu0 %v2889_v61 }
  0xb2   :  { %2653 = vmatprep.subr.bf16.mxu0 %v2892_v4  ;;  %p2965_p11 = por %p2964_p10, %p2963_p9 }
  0xb3   :  { %2646 = vmatpush3.bf16.msra.mxu1 %v2891_v1 }
  0xb4   :  { %2040 = vmatmul.mubr.bf16.vlgmr.msra.gmra.mrb[16].mxu0 %v71_v3  ;;  %2675 = vmatprep.subr.bf16.mxu1 %v2894_v10  ;;  %p2966_p12 = pnand %p2965_p11, %p2959_p8 }
  0xb5   :  { %2654 = vmatpush3.bf16.msra.mxu0 %v2893_v7  ;;  %2119 = vmatprep.mubr.bf16.mxu0 %v76_v40 }
  0xb6   :  { %2080 = vmatmul.mubr.bf16.vlgmr.msra.gmra.mrb[16].mxu1 %v73_v9  ;;  %2655 = vmatprep.subr.bf16.mxu0 %v2896_v12 }
  0xb7   :  { %2676 = vmatpush3.bf16.msra.mxu1 %v2895_v11  ;;  %2159 = vmatprep.mubr.bf16.mxu1 %v78_v46 }
  0xb8   :  { %2677 = vmatprep.subr.bf16.mxu1 %v2898_v14 }
  0xb9   :  { %2656 = vmatpush3.bf16.msra.mxu0 %v2897_v13 }
  0xba   :  { %2657 = vmatprep.subr.bf16.mxu0 %v2900_v16 }
  0xbb   :  { %2678 = vmatpush3.bf16.msra.mxu1 %v2899_v15 }
  0xbc   :  { %2679 = vmatprep.subr.bf16.mxu1 %v2902_v18 }
  0xbd   :  { %2658 = vmatpush3.bf16.msra.mxu0 %v2901_v17 }
  0xbe   :  { %2659 = vmatprep.subr.bf16.mxu0 %v2904_v20 }
  0xbf   :  { %2680 = vmatpush3.bf16.msra.mxu1 %v2903_v19 }
  0xc0   :  { %2681 = vmatprep.subr.bf16.mxu1 %v2906_v22 }
  0xc1   :  { %2660 = vmatpush3.bf16.msra.mxu0 %v2905_v21 }
  0xc2   :  { %2661 = vmatprep.subr.bf16.mxu0 %v2908_v24 }
  0xc3   :  { %2682 = vmatpush3.bf16.msra.mxu1 %v2907_v23 }
  0xc4   :  { %2683 = vmatprep.subr.bf16.mxu1 %v2910_v26 }
  0xc5   :  { %2662 = vmatpush3.bf16.msra.mxu0 %v2909_v25 }
  0xc6   :  { %2663 = vmatprep.subr.bf16.mxu0 %v2912_v28 }
  0xc7   :  { %2684 = vmatpush3.bf16.msra.mxu1 %v2911_v27 }
  0xc8   :  { %2685 = vmatprep.subr.bf16.mxu1 %v2914_v30 }
  0xc9   :  { %2664 = vmatpush3.bf16.msra.mxu0 %v2913_v29 }
  0xca   :  { %2665 = vmatprep.subr.bf16.mxu0 %v2916_v32 }
  0xcb   :  { %2686 = vmatpush3.bf16.msra.mxu1 %v2915_v31 }
  0xcc   :  { %2687 = vmatprep.subr.bf16.mxu1 %v2918_v34 }
  0xcd   :  { %2666 = vmatpush3.bf16.msra.mxu0 %v2917_v33 }
  0xce   :  { %2667 = vmatprep.subr.bf16.mxu0 %v2920_v36 }
  0xcf   :  { %2688 = vmatpush3.bf16.msra.mxu1 %v2919_v35 }
  0xd0   :  { %2689 = vmatprep.subr.bf16.mxu1 %v2922_v38 }
  0xd1   :  { %2668 = vmatpush3.bf16.msra.mxu0 %v2921_v37 }
  0xd2   :  { %2706 = vmatprep.subr.bf16.mxu0 %v2987_v43 }
  0xd3   :  { %2690 = vmatpush3.bf16.msra.mxu1 %v2923_v41 }
  0xd4   :  { %2120 = vmatmul.mubr.bf16.vlgmr.msra.gmra.mrb[20].mxu0 %v75_v45 }
  0xd5   :  { %2707 = vmatpush3.bf16.msra.mxu0 %v2924_v47  ;;  %2722 = vmatprep.mubr.msk.bf16.mxu0 %vm2988_vm0, %v2987_v43 }
  0xd6   :  { %2160 = vmatmul.mubr.bf16.vlgmr.msra.gmra.mrb[20].mxu1 %v77_v49  ;;  %2708 = vmatprep.subr.bf16.mxu0 %v2987_v43 }
  0xd9   :  { %2709 = vmatpush3.bf16.msra.mxu0 %v2925_v50 }
  0xda   :  { %2710 = vmatprep.subr.bf16.mxu0 %v2987_v43 }
  0xdd   :  { %2711 = vmatpush3.bf16.msra.mxu0 %v2926_v51 }
  0xde   :  { %2712 = vmatprep.subr.bf16.mxu0 %v2987_v43 }
  0xe1   :  { %2713 = vmatpush3.bf16.msra.mxu0 %v2927_v52 }
  0xe2   :  { %2714 = vmatprep.subr.bf16.mxu0 %v2987_v43 }
  0xe5   :  { %2715 = vmatpush3.bf16.msra.mxu0 %v2928_v53 }
  0xe6   :  { %2716 = vmatprep.subr.bf16.mxu0 %v2987_v43 }
  0xe9   :  { %2717 = vmatpush3.bf16.msra.mxu0 %v2929_v54 }
  0xea   :  { %2718 = vmatprep.subr.bf16.mxu0 %v2987_v43 }
  0xed   :  { %2719 = vmatpush3.bf16.msra.mxu0 %v2930_v55 }
  0xee   :  { %2720 = vmatprep.subr.bf16.mxu0 %v2987_v43 }
  0xf1   :  { %2721 = vmatpush3.bf16.msra.mxu0 %v2931_v56 }
  0xf4   :  { %2723 = vmatmul.mubr.bf16.vlgmr.msra.gmra.mrb[24].mxu0 %v79_v58 }
 0x107   :  { %v2449_v59 = vpop.f32.mrb[0].mxu0 }
 0x108   :  { %v2450_v61 = vpop.f32.mrb[1].mxu0 }
 0x109   :  { %v2451_v62 = vadd.f32 %v2450_v61, %v2449_v59  ;;  %v2452_v63 = vpop.f32.mrb[2].mxu0  ;;  %v2471_v0 = vpop.f32.mrb[0].mxu1 }
 0x10a   :  { %v2453_v1 = vpop.f32.mrb[3].mxu0  ;;  %v2472_v3 = vpop.f32.mrb[1].mxu1 }
 0x10b   :  { %v1722_v2 = vadd.f32 %v2451_v62, %v2232_v60  ;;  %v2473_v4 = vadd.f32 %v2472_v3, %v2471_v0  ;;  %v2474_v5 = vpop.f32.mrb[2].mxu1 }
 0x10c   :  { %v2475_v6 = vpop.f32.mrb[3].mxu1 }
 0x10d   :  { %v1762_v7 = vadd.f32 %v2473_v4, %v1722_v2 }
 0x127   :  { %v2493_v8 = vpop.f32.mrb[4].mxu0 }
 0x128   :  { %v2494_v9 = vpop.f32.mrb[5].mxu0 }
 0x129   :  { %v2495_v10 = vadd.f32 %v2494_v9, %v2493_v8  ;;  %v2496_v11 = vpop.f32.mrb[6].mxu0  ;;  %v2515_v12 = vpop.f32.mrb[4].mxu1 }
 0x12a   :  { %v2497_v13 = vpop.f32.mrb[7].mxu0  ;;  %v2516_v15 = vpop.f32.mrb[5].mxu1 }
 0x12b   :  { %v1802_v14 = vadd.f32 %v2495_v10, %v1762_v7  ;;  %v2517_v16 = vadd.f32 %v2516_v15, %v2515_v12  ;;  %v2518_v17 = vpop.f32.mrb[6].mxu1 }
 0x12c   :  { %v2519_v18 = vpop.f32.mrb[7].mxu1 }
 0x12d   :  { %v1842_v19 = vadd.f32 %v2517_v16, %v1802_v14 }
 0x147   :  { %v2537_v20 = vpop.f32.mrb[8].mxu0 }
 0x148   :  { %v2538_v21 = vpop.f32.mrb[9].mxu0 }
 0x149   :  { %v2539_v22 = vadd.f32 %v2538_v21, %v2537_v20  ;;  %v2540_v23 = vpop.f32.mrb[10].mxu0  ;;  %v2559_v24 = vpop.f32.mrb[8].mxu1 }
 0x14a   :  { %v2541_v25 = vpop.f32.mrb[11].mxu0  ;;  %v2560_v26 = vpop.f32.mrb[9].mxu1 }
 0x14b   :  { %v1882_v27 = vadd.f32 %v2539_v22, %v1842_v19  ;;  %v2561_v28 = vadd.f32 %v2560_v26, %v2559_v24  ;;  %v2562_v29 = vpop.f32.mrb[10].mxu1 }
 0x14c   :  { %v2563_v30 = vpop.f32.mrb[11].mxu1 }
 0x14d   :  { %v1922_v31 = vadd.f32 %v2561_v28, %v1882_v27 }
 0x167   :  { %v2581_v32 = vpop.f32.mrb[12].mxu0 }
 0x168   :  { %v2582_v33 = vpop.f32.mrb[13].mxu0 }
 0x169   :  { %v2583_v34 = vadd.f32 %v2582_v33, %v2581_v32  ;;  %v2584_v35 = vpop.f32.mrb[14].mxu0  ;;  %v2603_v36 = vpop.f32.mrb[12].mxu1 }
 0x16a   :  { %v2585_v37 = vpop.f32.mrb[15].mxu0  ;;  %v2604_v39 = vpop.f32.mrb[13].mxu1 }
 0x16b   :  { %v1962_v38 = vadd.f32 %v2583_v34, %v1922_v31  ;;  %v2605_v40 = vadd.f32 %v2604_v39, %v2603_v36  ;;  %v2606_v41 = vpop.f32.mrb[14].mxu1 }
 0x16c   :  { %v2607_v42 = vpop.f32.mrb[15].mxu1 }
 0x16d   :  { %v2002_v43 = vadd.f32 %v2605_v40, %v1962_v38 }
 0x187   :  { %v2625_v44 = vpop.f32.mrb[16].mxu0 }
 0x188   :  { %v2626_v45 = vpop.f32.mrb[17].mxu0 }
 0x189   :  { %v2627_v46 = vadd.f32 %v2626_v45, %v2625_v44  ;;  %v2628_v47 = vpop.f32.mrb[18].mxu0  ;;  %v2647_v48 = vpop.f32.mrb[16].mxu1 }
 0x18a   :  { %v2629_v49 = vpop.f32.mrb[19].mxu0  ;;  %v2648_v51 = vpop.f32.mrb[17].mxu1 }
 0x18b   :  { %v2042_v50 = vadd.f32 %v2627_v46, %v2002_v43  ;;  %v2649_v52 = vadd.f32 %v2648_v51, %v2647_v48  ;;  %v2650_v53 = vpop.f32.mrb[18].mxu1 }
 0x18c   :  { %v2651_v54 = vpop.f32.mrb[19].mxu1 }
 0x18d   :  { %v2082_v55 = vadd.f32 %v2649_v52, %v2042_v50 }
 0x1a7   :  { %v2669_v56 = vpop.f32.mrb[20].mxu0 }
 0x1a8   :  { %v2670_v57 = vpop.f32.mrb[21].mxu0 }
 0x1a9   :  { %v2691_v58 = vpop.f32.mrb[20].mxu1  ;;  %v2671_v59 = vadd.f32 %v2670_v57, %v2669_v56  ;;  %v2672_v60 = vpop.f32.mrb[22].mxu0 }
 0x1aa   :  { %v2692_v61 = vpop.f32.mrb[21].mxu1  ;;  %v2673_v62 = vpop.f32.mrb[23].mxu0 }
 0x1ab   :  { %v2693_v63 = vadd.f32 %v2692_v61, %v2691_v58  ;;  %v2694_v0 = vpop.f32.mrb[22].mxu1  ;;  %v2122_v1 = vadd.f32 %v2671_v59, %v2082_v55 }
 0x1ac   :  { %v2695_v2 = vpop.f32.mrb[23].mxu1 }
 0x1ad   :  { %v2162_v3 = vadd.f32 %v2693_v63, %v2122_v1 }
 0x1c7   :  { %v2201_v4 = vpop.f32.mrb[24].mxu0 }
 0x1c8   :  { %v2202_v5 = vadd.f32 %v2201_v4, %v2162_v3  ;;  %v2724_v6 = vpop.f32.mrb[25].mxu0 }
 0x1c9   :  { %v2204_v7 = vpop.f32.mrb[26].mxu0 }
 0x1ca   :  { %v2725_v8 = vpop.f32.mrb[27].mxu0  ;;  %2207 = vmax.xlane.f32.xlu0 %v2202_v5 }
 0x257   :  { %v2208_v9 = vpop.xlane.xlu0 %2207 }
 0x258   :  { %v2209_v10 = vsub.f32 %v2202_v5, %v2208_v9 }
 0x25a   :  { %v2210_v11 = vmul.f32 1.442695, %v2209_v10 }
 0x25c   :  { %2932 = vpow2.f32 %v2210_v11 }
 0x266   :  { %v2933_v12 = vpop.eup %2932 }
 0x267   :  { %2212 = vadd.xlane.f32.xlu0 %v2933_v12 }
 0x2f4   :  { %v2213_v13 = vpop.xlane.xlu0 %2212 }
 0x2f5   :  { %2934 = vrcp.f32 %v2213_v13 }
 0x2ff   :  { %v2935_v14 = vpop.eup %2934 }
 0x300   :  { %v2215_v15 = vmul.f32 %v2935_v14, %v2933_v12 }
 0x302   :  { %2216 = vst [vmem:[#allocation5] sm:$0xff] %v2215_v15 }
 0x303   :  { %2969 = shalt.err (!%p2966_p12)
}
 0x304   :  { %s2970_s25 = scalar_lea.hbm %s3115_s3, 128 }
 0x305   :  { %p2971_p13 = scmp.ne.s32.totalorder %s3115_s3, %s2970_s25  ;;  %p2974_p0 = scmp.lt.u32.totalorder %s2970_s25, %s3115_s3 }
 0x307   :  { %p2976_p1 = pnand %p2974_p0, %p2971_p13 }
 0x309   :  { %2979 = shalt.err (!%p2976_p1)
}
 0x30a   :  { %2226 = dma.vmem_to_hbm [thread:$0]  %s2224_s2, 128, %s3115_s3, [#allocation4]  }
 0x30b   :  { %2982 = dma.done.wait [#allocation4], 128  }
 0x30c   :  { %2983 = vsyncadd [#allocation4], 4294967168 }
 0x30d   :  { %2230 = vsyncpa [#allocation3], 1 }
 0x30e   :  { %2231 = vsyncpa [#allocation4], 1 }

</bundles_post_ra>
